<compile_context>
chip_gen: v7x
topology: tpu7x:2x2x1
jax: 0.10.0
libtpu: 0.0.40
codegen_flags: <defaults>
</compile_context>

<pallas_src>
import functools

import jax
import jax.numpy as jnp
from jax import lax
from jax.experimental import pallas as pl
from jax.experimental.pallas import tpu as pltpu


def _round_up(x, m):
    return ((x + m - 1) // m) * m


def _supcon_tile_kernel(rowf_ref, colf_ref, lab_r_ref, lab_c_ref,
                        psum_ref, logden_ref, m_scr, l_scr,
                        *, inv_temp, n_valid, block_m, block_n):
    """One (row-block i, column-block j) step of the online SupCon reduction."""
    i = pl.program_id(0)
    j = pl.program_id(1)

    @pl.when(j == 0)
    def _():
        m_scr[...] = jnp.full_like(m_scr, -jnp.inf)
        l_scr[...] = jnp.zeros_like(l_scr)
        psum_ref[...] = jnp.zeros_like(psum_ref)   # resident output accumulator

    # [TM, TN] scaled logits: bf16 operands on the MXU, f32 accumulation.
    s = lax.dot_general(rowf_ref[...], colf_ref[...],
                        dimension_numbers=(((1,), (1,)), ((), ())),
                        preferred_element_type=jnp.float32)
    logits = s * inv_temp

    # Boolean masks for this tile (no f32 mask multiplies).
    r_ids = i * block_m + lax.broadcasted_iota(jnp.int32, logits.shape, 0)
    c_ids = j * block_n + lax.broadcasted_iota(jnp.int32, logits.shape, 1)
    col_ok = c_ids < n_valid                       # exclude padded columns
    keep = col_ok & (r_ids != c_ids)               # exclude self-contrast diag

    # Online max / rescaled exp-sum for the softmax denominator.
    m_prev = m_scr[...]
    tile_max = jnp.max(jnp.where(col_ok, logits, -jnp.inf),
                       axis=1, keepdims=True)
    m_new = jnp.maximum(m_prev, tile_max)
    alpha = jnp.exp(m_prev - m_new)
    p = jnp.where(keep, jnp.exp(logits - m_new), 0.0)
    l_scr[...] = alpha * l_scr[...] + jnp.sum(p, axis=1, keepdims=True)
    m_scr[...] = m_new

    # Positive-pair logit accumulation: sum(pos_mask * logits) per anchor row.
    pos = keep & (lab_r_ref[...] == lab_c_ref[...])
    psum_ref[...] += jnp.sum(jnp.where(pos, logits, 0.0),
                             axis=1, keepdims=True)

    @pl.when(j == pl.num_programs(1) - 1)
    def _():
        logden_ref[...] = m_scr[...] + jnp.log(l_scr[...])   # logsumexp row


def async_supcon_loss(features, labels, target_labels,
                      temperature=0.07, contrast_mode='all',
                      base_temperature=0.07, reduction='mean',
                      block=256):
    """Pallas-backed forward of AsyncSupConLoss (contrast_mode='all')."""
    assert contrast_mode == 'all'
    # TODO(synk): contrast_mode='one' (anchor = first view only) not wired up.
    if reduction not in ('mean', 'none'):
        raise ValueError(f'loss reduction not supported: {reduction}')

    if features.ndim < 3:
        raise ValueError('`features` needs to be [bsz, n_views, ...]')
    if features.ndim > 3:
        features = features.reshape(features.shape[0], features.shape[1], -1)

    bsz, n_views, d = features.shape
    n = bsz * n_views

    # contrast_feature = cat(unbind(features, dim=1), dim=0)  -> view-major.
    contrast_feature = jnp.transpose(features, (1, 0, 2)).reshape(n, d)
    contrast_feature = contrast_feature.astype(jnp.float32)

    # Tile sizes: square row/col tiles; pad N to a tile multiple and D to a
    # multiple of 128 (MXU / lane alignment).  bf16 feature operands.
    if n <= block:
        tm = tn = _round_up(n, 16)
    else:
        tm = tn = block
    n_pad = _round_up(n, tn)
    d_pad = _round_up(d, 128)

    feat_p = jnp.pad(contrast_feature, ((0, n_pad - n), (0, d_pad - d)))
    feat_bf = feat_p.astype(jnp.bfloat16)

    # Labels tiled over views (row r = v*bsz + b has label labels[b]), int32.
    labels = labels.astype(jnp.int32)
    lab_full = jnp.tile(labels, n_views)                               # [N]
    lab_p = jnp.pad(lab_full, (0, n_pad - n), constant_values=-1)
    lab_rows = lab_p.reshape(n_pad, 1)      # anchor-row labels   [N_pad, 1]
    lab_cols = lab_p.reshape(1, n_pad)      # contrast-col labels [1, N_pad]

    kernel = functools.partial(
        _supcon_tile_kernel,
        inv_temp=float(1.0 / temperature),
        n_valid=n, block_m=tm, block_n=tn)

    grid = (n_pad // tm, n_pad // tn)
    psum, log_denom = pl.pallas_call(
        kernel,
        out_shape=(jax.ShapeDtypeStruct((n_pad, 1), jnp.float32),   # sum_pos logits
                   jax.ShapeDtypeStruct((n_pad, 1), jnp.float32)),  # logsumexp
        grid_spec=pltpu.PrefetchScalarGridSpec(
            num_scalar_prefetch=0,
            grid=grid,
            in_specs=[
                pl.BlockSpec((tm, d_pad), lambda i, j: (i, 0)),   # anchor rows
                pl.BlockSpec((tn, d_pad), lambda i, j: (j, 0)),   # contrast cols
                pl.BlockSpec((tm, 1), lambda i, j: (i, 0)),       # row labels
                pl.BlockSpec((1, tn), lambda i, j: (0, j)),       # col labels
            ],
            out_specs=[pl.BlockSpec((tm, 1), lambda i, j: (i, 0)),
                       pl.BlockSpec((tm, 1), lambda i, j: (i, 0))],
            scratch_shapes=[pltpu.VMEM((tm, 1), jnp.float32),     # running max
                            pltpu.VMEM((tm, 1), jnp.float32)],    # exp-sum
        ),
        compiler_params=pltpu.CompilerParams(
            dimension_semantics=("parallel", "arbitrary")),
    )(feat_bf, feat_bf, lab_rows, lab_cols)

    psum = psum[:n, 0]                                            # [N]
    log_denom = log_denom[:n, 0]                                  # [N]

    # Positive counts per anchor row are integer-exact and O(bsz^2) - computed
    # in plain JAX instead of accumulating [TM,1] counts per tile in-kernel.
    same = labels[:, None] == labels[None, :]                     # [bsz, bsz]
    pos_per_sample = jnp.sum(same, axis=1) * n_views - 1          # exclude self
    cnt = jnp.tile(pos_per_sample, n_views).astype(jnp.float32)   # [N]

    safe_cnt = jnp.where(cnt > 0, cnt, 1.0)
    mean_log_prob_pos = (psum - cnt * log_denom) / safe_cnt
    # Rows with no positives would be 0/0 (NaN) in the torch original; guard to 0.
    mean_log_prob_pos = jnp.where(cnt > 0, mean_log_prob_pos, 0.0)
    per_row = (-(temperature / base_temperature)) * mean_log_prob_pos

    # curr_class_mask: count of matches against target_labels, per sample.
    ccm = jnp.zeros((bsz,), jnp.int32)
    for tc in target_labels:
        ccm = ccm + (labels == tc).astype(jnp.int32)
    weighted = jnp.tile(ccm.astype(jnp.float32), n_views) * per_row   # [N]
    weighted = weighted.reshape(n_views, bsz)                         # [views, bsz]

    if reduction == 'mean':
        return jnp.mean(weighted)
    return jnp.mean(weighted, axis=0)


def _reference_async_supcon(features, labels, target_labels,
                            temperature=0.07, base_temperature=0.07,
                            reduction='mean'):
    """Pure-JAX reference mirroring the torch code (contrast_mode='all')."""
    bsz, n_views, d = features.shape
    n = bsz * n_views
    feat = jnp.transpose(features, (1, 0, 2)).reshape(n, d)
    # mirror the kernel's bf16 MXU operands (f32 accumulation)
    feat = feat.astype(jnp.bfloat16).astype(jnp.float32)
    adc = jnp.matmul(feat, feat.T,
                     precision=lax.Precision.HIGHEST) / temperature
    logits = adc - jnp.max(adc, axis=1, keepdims=True)
    mask = (labels.reshape(-1, 1) == labels.reshape(1, -1)).astype(jnp.float32)
    mask = jnp.tile(mask, (n_views, n_views))
    logits_mask = 1.0 - jnp.eye(n, dtype=jnp.float32)
    mask = mask * logits_mask
    exp_logits = jnp.exp(logits) * logits_mask
    log_prob = logits - jnp.log(jnp.sum(exp_logits, axis=1, keepdims=True))
    mean_log_prob_pos = jnp.sum(mask * log_prob, axis=1) / jnp.sum(mask, axis=1)
    loss = -(temperature / base_temperature) * mean_log_prob_pos
    ccm = jnp.zeros((bsz,), jnp.int32)
    for tc in target_labels:
        ccm = ccm + (labels == tc).astype(jnp.int32)
    loss = ccm.astype(jnp.float32)[None, :] * loss.reshape(n_views, bsz)
    if reduction == 'mean':
        return jnp.mean(loss)
    return jnp.mean(loss, axis=0)


if __name__ == "__main__":
    key = jax.random.PRNGKey(0)

    # --- small demo (single tile) ---
    k1, k2, k3, k4 = jax.random.split(key, 4)
    bsz, n_views, d = 8, 2, 32
    features = jax.random.normal(k1, (bsz, n_views, d), dtype=jnp.float32)
    features = features / jnp.linalg.norm(features, axis=-1, keepdims=True)
    labels = jax.random.randint(k2, (bsz,), 0, 4, dtype=jnp.int32)
    target_labels = [0, 1]

    loss = async_supcon_loss(features, labels, target_labels)
    loss = jax.block_until_ready(loss)
    ref = _reference_async_supcon(features, labels, target_labels)
    assert jnp.allclose(loss, ref, atol=1e-3, rtol=1e-3), (loss, ref)

    # reduction='none' path
    loss_n = jax.block_until_ready(
        async_supcon_loss(features, labels, target_labels, reduction='none'))
    ref_n = _reference_async_supcon(features, labels, target_labels,
                                    reduction='none')
    assert jnp.allclose(loss_n, ref_n, atol=1e-3, rtol=1e-3), (loss_n, ref_n)

    # --- larger check exercising the multi-tile / padded path (grid 2x2) ---
    bsz2, n_views2, d2 = 160, 2, 64
    feats2 = jax.random.normal(k3, (bsz2, n_views2, d2), dtype=jnp.float32)
    feats2 = feats2 / jnp.linalg.norm(feats2, axis=-1, keepdims=True)
    labels2 = jax.random.randint(k4, (bsz2,), 0, 8, dtype=jnp.int32)
    target_labels2 = [0, 2, 5]

    loss2 = async_supcon_loss(feats2, labels2, target_labels2)
    loss2 = jax.block_until_ready(loss2)
    ref2 = _reference_async_supcon(feats2, labels2, target_labels2)
    assert jnp.allclose(loss2, ref2, atol=1e-3, rtol=1e-3), (loss2, ref2)

    print("KERNEL_OK")
</pallas_src>

<mosaic_0001>
module attributes {stable_mosaic.version = 11 : i64} {
  func.func @_supcon_tile_kernel(%arg0: i32, %arg1: i32, %arg2: memref<16x128xbf16, #tpu.memory_space<vmem>>, %arg3: memref<16x128xbf16, #tpu.memory_space<vmem>>, %arg4: memref<16x1xi32, #tpu.memory_space<vmem>>, %arg5: memref<1x16xi32, #tpu.memory_space<vmem>>, %arg6: memref<16x1xf32, #tpu.memory_space<vmem>>, %arg7: memref<16x1xf32, #tpu.memory_space<vmem>>, %arg8: memref<16x1xf32, #tpu.memory_space<vmem>>, %arg9: memref<16x1xf32, #tpu.memory_space<vmem>>) attributes {dimension_semantics = [#tpu.dimension_semantics<parallel>, #tpu.dimension_semantics<arbitrary>], iteration_bounds = array<i64: 1, 1>, scalar_prefetch = 0 : i64, scratch_operands = 2 : i64, tpu.core_type = #tpu.core_type<tc>, window_params = [{transform_indices = @transform_0, window_bounds = array<i64: 16, 128>}, {transform_indices = @transform_1, window_bounds = array<i64: 16, 128>}, {transform_indices = @transform_2, window_bounds = array<i64: 16, 1>}, {transform_indices = @transform_3, window_bounds = array<i64: 1, 16>}, {transform_indices = @transform_4, window_bounds = array<i64: 16, 1>}, {transform_indices = @transform_5, window_bounds = array<i64: 16, 1>}]} {
    %c0_i32 = arith.constant 0 : i32
    %0 = arith.cmpi eq, %arg1, %c0_i32 : i32
    %1 = arith.extui %0 : i1 to i32
    %c0_i32_0 = arith.constant 0 : i32
    %2 = arith.cmpi ne, %1, %c0_i32_0 : i32
    scf.if %2 {
      %cst_31 = arith.constant 0xFF800000 : f32
      %56 = vector.broadcast %cst_31 : f32 to vector<16x1xf32>
      %c0_32 = arith.constant 0 : index
      %c0_33 = arith.constant 0 : index
      %57 = vector.load %arg8[%c0_32, %c0_33] : memref<16x1xf32, #tpu.memory_space<vmem>>, vector<16x1xf32>
      tpu.vector_store %arg8[%c0_32, %c0_33], %56 {strides = array<i32>} : memref<16x1xf32, #tpu.memory_space<vmem>>, vector<16x1xf32>,
      %cst_34 = arith.constant 0.000000e+00 : f32
      %58 = vector.broadcast %cst_34 : f32 to vector<16x1xf32>
      %c0_35 = arith.constant 0 : index
      %c0_36 = arith.constant 0 : index
      %59 = vector.load %arg9[%c0_35, %c0_36] : memref<16x1xf32, #tpu.memory_space<vmem>>, vector<16x1xf32>
      tpu.vector_store %arg9[%c0_35, %c0_36], %58 {strides = array<i32>} : memref<16x1xf32, #tpu.memory_space<vmem>>, vector<16x1xf32>,
      %cst_37 = arith.constant 0.000000e+00 : f32
      %60 = vector.broadcast %cst_37 : f32 to vector<16x1xf32>
      %c0_38 = arith.constant 0 : index
      %c0_39 = arith.constant 0 : index
      %61 = vector.load %arg6[%c0_38, %c0_39] : memref<16x1xf32, #tpu.memory_space<vmem>>, vector<16x1xf32>
      tpu.vector_store %arg6[%c0_38, %c0_39], %60 {strides = array<i32>} : memref<16x1xf32, #tpu.memory_space<vmem>>, vector<16x1xf32>,
    } else {
    }
    %c0 = arith.constant 0 : index
    %c0_1 = arith.constant 0 : index
    %3 = vector.load %arg2[%c0, %c0_1] : memref<16x128xbf16, #tpu.memory_space<vmem>>, vector<16x128xbf16>
    %c0_2 = arith.constant 0 : index
    %c0_3 = arith.constant 0 : index
    %4 = vector.load %arg3[%c0_2, %c0_3] : memref<16x128xbf16, #tpu.memory_space<vmem>>, vector<16x128xbf16>
    %cst = arith.constant dense<0.000000e+00> : vector<16x16xf32>
    %5 = tpu.matmul %3, %4, %cst {dimension_numbers = #tpu.dot_dimension_numbers<[1], [1], [0], [0], [0, 0, 1, 0], [], []>} : vector<16x128xbf16>, vector<16x128xbf16>, vector<16x16xf32> -> vector<16x16xf32>
    %cst_4 = arith.constant 14.2857141 : f32
    %6 = vector.broadcast %cst_4 : f32 to vector<16x16xf32>
    %7 = arith.mulf %5, %6 : vector<16x16xf32>
    %c16_i32 = arith.constant 16 : i32
    %8 = arith.muli %arg0, %c16_i32 : i32
    %9 = tpu.iota {dimensions = array<i32: 0>} : vector<16x16xi32>
    %10 = vector.broadcast %8 : i32 to vector<16x16xi32>
    %11 = arith.addi %10, %9 : vector<16x16xi32>
    %c16_i32_5 = arith.constant 16 : i32
    %12 = arith.muli %arg1, %c16_i32_5 : i32
    %13 = tpu.iota {dimensions = array<i32: 1>} : vector<16x16xi32>
    %14 = vector.broadcast %12 : i32 to vector<16x16xi32>
    %15 = arith.addi %14, %13 : vector<16x16xi32>
    %c16_i32_6 = arith.constant 16 : i32
    %16 = vector.broadcast %c16_i32_6 : i32 to vector<16x16xi32>
    %17 = arith.cmpi slt, %15, %16 : vector<16x16xi32>
    %18 = arith.cmpi ne, %11, %15 : vector<16x16xi32>
    %19 = arith.andi %17, %18 : vector<16x16xi1>
    %c0_7 = arith.constant 0 : index
    %c0_8 = arith.constant 0 : index
    %20 = vector.load %arg8[%c0_7, %c0_8] : memref<16x1xf32, #tpu.memory_space<vmem>>, vector<16x1xf32>
    %cst_9 = arith.constant 0xFF800000 : f32
    %21 = vector.broadcast %cst_9 : f32 to vector<16x16xf32>
    %22 = arith.select %17, %7, %21 : vector<16x16xi1>, vector<16x16xf32>
    %cst_10 = arith.constant dense<0xFF800000> : vector<16xf32>
    %23 = vector.multi_reduction <maximumf>, %22, %cst_10 [1] : vector<16x16xf32> to vector<16xf32>
    %24 = vector.shape_cast %23 : vector<16xf32> to vector<16x1xf32>
    %25 = arith.maximumf %20, %24 : vector<16x1xf32>
    %26 = arith.subf %20, %25 : vector<16x1xf32>
    %27 = math.exp %26 : vector<16x1xf32>
    %28 = vector.broadcast %25 : vector<16x1xf32> to vector<16x16xf32>
    %29 = arith.subf %7, %28 : vector<16x16xf32>
    %30 = math.exp %29 : vector<16x16xf32>
    %cst_11 = arith.constant 0.000000e+00 : f32
    %31 = vector.broadcast %cst_11 : f32 to vector<16x16xf32>
    %32 = arith.select %19, %30, %31 : vector<16x16xi1>, vector<16x16xf32>
    %c0_12 = arith.constant 0 : index
    %c0_13 = arith.constant 0 : index
    %33 = vector.load %arg9[%c0_12, %c0_13] : memref<16x1xf32, #tpu.memory_space<vmem>>, vector<16x1xf32>
    %34 = arith.mulf %27, %33 : vector<16x1xf32>
    %cst_14 = arith.constant dense<0.000000e+00> : vector<16xf32>
    %35 = vector.multi_reduction <add>, %32, %cst_14 [1] : vector<16x16xf32> to vector<16xf32>
    %36 = vector.shape_cast %35 : vector<16xf32> to vector<16x1xf32>
    %37 = arith.addf %34, %36 : vector<16x1xf32>
    %c0_15 = arith.constant 0 : index
    %c0_16 = arith.constant 0 : index
    %38 = vector.load %arg9[%c0_15, %c0_16] : memref<16x1xf32, #tpu.memory_space<vmem>>, vector<16x1xf32>
    tpu.vector_store %arg9[%c0_15, %c0_16], %37 {strides = array<i32>} : memref<16x1xf32, #tpu.memory_space<vmem>>, vector<16x1xf32>,
    %c0_17 = arith.constant 0 : index
    %c0_18 = arith.constant 0 : index
    %39 = vector.load %arg8[%c0_17, %c0_18] : memref<16x1xf32, #tpu.memory_space<vmem>>, vector<16x1xf32>
    tpu.vector_store %arg8[%c0_17, %c0_18], %25 {strides = array<i32>} : memref<16x1xf32, #tpu.memory_space<vmem>>, vector<16x1xf32>,
    %c0_19 = arith.constant 0 : index
    %c0_20 = arith.constant 0 : index
    %40 = vector.load %arg4[%c0_19, %c0_20] : memref<16x1xi32, #tpu.memory_space<vmem>>, vector<16x1xi32>
    %c0_21 = arith.constant 0 : index
    %c0_22 = arith.constant 0 : index
    %41 = vector.load %arg5[%c0_21, %c0_22] : memref<1x16xi32, #tpu.memory_space<vmem>>, vector<1x16xi32>
    %42 = vector.broadcast %40 : vector<16x1xi32> to vector<16x16xi32>
    %43 = vector.broadcast %41 : vector<1x16xi32> to vector<16x16xi32>
    %44 = arith.cmpi eq, %42, %43 : vector<16x16xi32>
    %45 = arith.andi %19, %44 : vector<16x16xi1>
    %c0_23 = arith.constant 0 : index
    %c0_24 = arith.constant 0 : index
    %46 = vector.load %arg6[%c0_23, %c0_24] : memref<16x1xf32, #tpu.memory_space<vmem>>, vector<16x1xf32>
    %cst_25 = arith.constant 0.000000e+00 : f32
    %47 = vector.broadcast %cst_25 : f32 to vector<16x16xf32>
    %48 = arith.select %45, %7, %47 : vector<16x16xi1>, vector<16x16xf32>
    %cst_26 = arith.constant dense<0.000000e+00> : vector<16xf32>
    %49 = vector.multi_reduction <add>, %48, %cst_26 [1] : vector<16x16xf32> to vector<16xf32>
    %50 = vector.shape_cast %49 : vector<16xf32> to vector<16x1xf32>
    %51 = arith.addf %46, %50 : vector<16x1xf32>
    %c0_27 = arith.constant 0 : index
    %c0_28 = arith.constant 0 : index
    %52 = vector.load %arg6[%c0_27, %c0_28] : memref<16x1xf32, #tpu.memory_space<vmem>>, vector<16x1xf32>
    tpu.vector_store %arg6[%c0_27, %c0_28], %51 {strides = array<i32>} : memref<16x1xf32, #tpu.memory_space<vmem>>, vector<16x1xf32>,
    %c0_i32_29 = arith.constant 0 : i32
    %53 = arith.cmpi eq, %arg1, %c0_i32_29 : i32
    %54 = arith.extui %53 : i1 to i32
    %c0_i32_30 = arith.constant 0 : i32
    %55 = arith.cmpi ne, %54, %c0_i32_30 : i32
    scf.if %55 {
      %c0_31 = arith.constant 0 : index
      %c0_32 = arith.constant 0 : index
      %56 = vector.load %arg8[%c0_31, %c0_32] : memref<16x1xf32, #tpu.memory_space<vmem>>, vector<16x1xf32>
      %c0_33 = arith.constant 0 : index
      %c0_34 = arith.constant 0 : index
      %57 = vector.load %arg9[%c0_33, %c0_34] : memref<16x1xf32, #tpu.memory_space<vmem>>, vector<16x1xf32>
      %58 = math.log %57 : vector<16x1xf32>
      %59 = arith.addf %56, %58 : vector<16x1xf32>
      %c0_35 = arith.constant 0 : index
      %c0_36 = arith.constant 0 : index
      %60 = vector.load %arg7[%c0_35, %c0_36] : memref<16x1xf32, #tpu.memory_space<vmem>>, vector<16x1xf32>
      tpu.vector_store %arg7[%c0_35, %c0_36], %59 {strides = array<i32>} : memref<16x1xf32, #tpu.memory_space<vmem>>, vector<16x1xf32>,
    } else {
    }
    return
  }
  func.func @transform_0(%arg0: i32, %arg1: i32) -> (i32, i32) {
    %c0_i32 = arith.constant 0 : i32
    %c0_i32_0 = arith.constant 0 : i32
    return %arg0, %c0_i32 : i32, i32
  }
  func.func @transform_1(%arg0: i32, %arg1: i32) -> (i32, i32) {
    %c0_i32 = arith.constant 0 : i32
    %c0_i32_0 = arith.constant 0 : i32
    return %arg1, %c0_i32 : i32, i32
  }
  func.func @transform_2(%arg0: i32, %arg1: i32) -> (i32, i32) {
    %c0_i32 = arith.constant 0 : i32
    %c0_i32_0 = arith.constant 0 : i32
    return %arg0, %c0_i32 : i32, i32
  }
  func.func @transform_3(%arg0: i32, %arg1: i32) -> (i32, i32) {
    %c0_i32 = arith.constant 0 : i32
    %c0_i32_0 = arith.constant 0 : i32
    return %c0_i32, %arg1 : i32, i32
  }
  func.func @transform_4(%arg0: i32, %arg1: i32) -> (i32, i32) {
    %c0_i32 = arith.constant 0 : i32
    %c0_i32_0 = arith.constant 0 : i32
    return %arg0, %c0_i32 : i32, i32
  }
  func.func @transform_5(%arg0: i32, %arg1: i32) -> (i32, i32) {
    %c0_i32 = arith.constant 0 : i32
    %c0_i32_0 = arith.constant 0 : i32
    return %arg0, %c0_i32 : i32, i32
  }
}

</mosaic_0001>

<bundles_post_ra>
// kernel: tpu_custom_call.1
= control target key start
LH: loop header
LB: loop body
LE: loop exit
PB: predicated region body
PF: predicated region fallthrough
CT: control target
= control target key end

     0   :  { %v246_v0 = vmov 0.0   ;;  %vm247_vm0 = vmmov 0   ;;  %v248_v3 = vmov 0   ;;  %vm24_vm1 = vcmask 7168   ;;  %s362_s1 = inlined_call_operand.vmem [shape: bf16[16,128], index: 1, kind: input, shape index: {}]   ;;  %s363_s0 = inlined_call_operand.vmem [shape: bf16[16,128], index: 0, kind: input, shape index: {}]   ;;  %s364_s2 = inlined_call_operand.vmem [shape: s32[16,1], index: 2, kind: input, shape index: {}]   ;;  %s365_s3 = inlined_call_operand.vmem [shape: s32[1,16], index: 3, kind: input, shape index: {}]   ;;  %s366_s4 = inlined_call_operand.vmem [shape: f32[16,1], index: 4, kind: output, shape index: {0}]   ;;  %s367_s5 = inlined_call_operand.vmem [shape: f32[16,1], index: 5, kind: output, shape index: {1}]  }
   0x1   :  { %220 = vmatprep.subr.bf16.mxu0 %v246_v0  ;;  %v232_v1 = vld [vmem:[%s362_s1] sm:$0xff]   ;;  %222 = vmatprep.mubr.msk.bf16.mxu0 %vm247_vm0, %v246_v0  ;;  %v249_v4 = vmov -inf   ;;  %27 = vst.msk [vmem:[#allocation3] sm:$0xff] %vm24_vm1, %v246_v0  ;;  %28 = vst.msk [vmem:[#allocation3 + $0x8] sm:$0xff] %vm24_vm1, %v246_v0  ;;  %v91_v5 = vlaneseq  ;;  %vm111_vm3 = vcmask 130048   ;;  %v162_v27 = vld [vmem:[%s364_s2 + $0x8] sm:$0xff] }
   0x2   :  { %221 = vmatpush3.bf16.xpose.msra.mxu0 %v232_v1  ;;  %v233_v2 = vld [vmem:[%s363_s0] sm:$0xff]   ;;  %231 = vset.pattern.permute.xlu0 %v248_v3  ;;  %25 = vst.msk [vmem:[#allocation2] sm:$0xff] %vm24_vm1, %v249_v4  ;;  %26 = vst.msk [vmem:[#allocation2 + $0x8] sm:$0xff] %vm24_vm1, %v249_v4 }
   0x3   :  { %230 = vset.pattern.permute.xlu1 %v248_v3  ;;  %v99_v6 = vand.u32 127, %v91_v5  ;;  %v161_v17 = vld [vmem:[%s364_s2] sm:$0xff]  ;;  %v92_v24 = vshrl.u32 %v91_v5, 7  ;;  %29 = vst.msk [vmem:[%s366_s4] sm:$0xff] %vm24_vm1, %v246_v0  ;;  %30 = vst.msk [vmem:[%s366_s4 + $0x8] sm:$0xff] %vm24_vm1, %v246_v0 }
   0x4   :  { %v217_v28 = vld [vmem:[%s365_s3] ss:$0 sm:$0xff] }
   0x5   :  { %vm102_vm2 = vcmp.lt.s32.totalorder %v99_v6, 16  ;;  %vm103_vm4 = vcmp.ne.s32.totalorder %v92_v24, %v99_v6  ;;  %v93_v39 = vadd.s32 8, %v92_v24 }
   0x6   :  { %vm313_vm5 = vmand %vm102_vm2, %vm103_vm4 }
   0x7   :  { %vm104_vm8 = vcmp.ne.s32.totalorder %v93_v39, %v99_v6 }
   0x8   :  { %vm106_vm9 = vmand %vm102_vm2, %vm104_vm8  ;;  %v144_v55 = vld [vmem:[#allocation3] sm:$0xff]  ;;  %v145_v59 = vld [vmem:[#allocation3 + $0x8] sm:$0xff] }
   0x9   :  { %223 = vmatmul.mubr.bf16.vlgmr.msra.gmra.mrb[0].mxu0 %v233_v2  ;;  %v107_v18 = vld [vmem:[#allocation2] sm:$0xff]  ;;  %v108_v21 = vld [vmem:[#allocation2 + $0x8] sm:$0xff] }
   0xa   :  { %v178_v49 = vld [vmem:[%s366_s4] sm:$0xff]  ;;  %v179_v0 = vld [vmem:[%s366_s4 + $0x8] sm:$0xff] }
  0xdc   :  { %v81_v7 = vpop.f32.mrb[0].mxu0 }
  0xdd   :  { %v88_v8 = vmul.f32 14.285714, %v81_v7  ;;  %v224_v9 = vpop.f32.mrb[1].mxu0 }
  0xde   :  { %v84_v10 = vpop.f32.mrb[2].mxu0 }
  0xdf   :  { %v294_v11 = vmul.f32 14.285714, %v84_v10  ;;  %v225_v12 = vpop.f32.mrb[3].mxu0  ;;  %v109_v13 = vsel %vm102_vm2, %v88_v8, -inf }
  0xe0   :  { %v112_v14 = vsel %vm111_vm3, %v109_v13, -inf }
  0xe1   :  { %113 = vmax.xlane.f32.xlu0 %v112_v14  ;;  %v110_v15 = vsel %vm102_vm2, %v294_v11, -inf }
  0xe2   :  { %v115_v16 = vsel %vm111_vm3, %v110_v15, -inf }
  0xe5   :  { %116 = vmax.xlane.f32.xlu0 %v115_v16 }
  0xfb   :  { %165 = vperm.xlu0 %231, %v161_v17  }
 0x16e   :  { %v114_v19 = vpop.xlane.xlu0 %113 }
 0x16f   :  { %v118_v20 = vmax.f32 %v107_v18, %v114_v19 }
 0x171   :  { %v120_v22 = vsub.f32 %v107_v18, %v118_v20  ;;  %159 = vst.msk [vmem:[#allocation2] sm:$0xff] %vm24_vm1, %v118_v20  ;;  %128 = vperm.xlu1 %230, %v118_v20  }
 0x172   :  { %v117_v23 = vpop.xlane.xlu0 %116 }
 0x173   :  { %v119_v25 = vmax.f32 %v108_v21, %v117_v23  ;;  %v122_v52 = vmul.f32 1.442695, %v120_v22 }
 0x175   :  { %v121_v26 = vsub.f32 %v108_v21, %v119_v25  ;;  %160 = vst.msk [vmem:[#allocation2 + $0x8] sm:$0xff] %vm24_vm1, %v119_v25  ;;  %133 = vperm.xlu1 %230, %v119_v25  }
 0x177   :  { %v124_v53 = vmul.f32 1.442695, %v121_v26 }
 0x178   :  { %v195_v7 = vld [vmem:[#allocation2] sm:$0xff] }
 0x179   :  { %168 = vperm.xlu1 %230, %v162_v27  }
 0x17a   :  { %v166_v30 = vpop.permute.xlu0 %165 }
 0x17b   :  { %vm174_vm6 = vcmp.eq.s32.totalorder %v166_v30, %v217_v28 }
 0x17c   :  { %vm176_vm7 = vmand %vm313_vm5, %vm174_vm6 }
 0x17d   :  { %v180_v31 = vsel %vm176_vm7, %v88_v8, 0.0 }
 0x17e   :  { %v182_v32 = vsel %vm111_vm3, %v180_v31, 0.0 }
 0x17f   :  { %183 = vadd.xlane.f32.xlu0 %v182_v32 }
 0x1f0   :  { %v129_v33 = vpop.permute.xlu1 %128 }
 0x1f1   :  { %v136_v34 = vsub.f32 %v88_v8, %v129_v33 }
 0x1f3   :  { %v138_v35 = vmul.f32 1.442695, %v136_v34 }
 0x1f4   :  { %v134_v36 = vpop.permute.xlu1 %133 }
 0x1f5   :  { %234 = vpow2.f32 %v138_v35  ;;  %v137_v37 = vsub.f32 %v294_v11, %v134_v36 }
 0x1f7   :  { %v140_v38 = vmul.f32 1.442695, %v137_v37 }
 0x1f8   :  { %v169_v40 = vpop.permute.xlu1 %168 }
 0x1f9   :  { %236 = vpow2.f32 %v140_v38  ;;  %vm175_vm10 = vcmp.eq.s32.totalorder %v169_v40, %v217_v28 }
 0x1fa   :  { %vm177_vm11 = vmand %vm106_vm9, %vm175_vm10  ;;  %238 = vpow2.f32 %v122_v52 }
 0x1fb   :  { %v181_v47 = vsel %vm177_vm11, %v294_v11, 0.0  ;;  %240 = vpow2.f32 %v124_v53  ;;  %v196_v11 = vld [vmem:[#allocation2 + $0x8] sm:$0xff] }
 0x1fc   :  { %v185_v48 = vsel %vm111_vm3, %v181_v47, 0.0 }
 0x1ff   :  { %v235_v41 = vpop.eup %234 }
 0x200   :  { %v142_v42 = vsel %vm313_vm5, %v235_v41, 0.0 }
 0x201   :  { %v148_v43 = vsel %vm111_vm3, %v142_v42, 0.0 }
 0x202   :  { %149 = vadd.xlane.f32.xlu1 %v148_v43 }
 0x203   :  { %v237_v44 = vpop.eup %236 }
 0x204   :  { %v143_v45 = vsel %vm106_vm9, %v237_v44, 0.0  ;;  %v239_v54 = vpop.eup %238 }
 0x205   :  { %v151_v46 = vsel %vm111_vm3, %v143_v45, 0.0  ;;  %v146_v56 = vmul.f32 %v239_v54, %v144_v55  ;;  %v241_v57 = vpop.eup %240 }
 0x206   :  { %152 = vadd.xlane.f32.xlu1 %v151_v46  ;;  %v147_v61 = vmul.f32 %v241_v57, %v145_v59 }
 0x20a   :  { %186 = vadd.xlane.f32.xlu1 %v185_v48 }
 0x20c   :  { %v184_v50 = vpop.xlane.xlu0 %183 }
 0x20d   :  { %v188_v51 = vadd.f32 %v184_v50, %v178_v49 }
 0x20f   :  { %190 = vst.msk [vmem:[%s366_s4] sm:$0xff] %vm24_vm1, %v188_v51 }
 0x28f   :  { %v150_v58 = vpop.xlane.xlu1 %149 }
 0x290   :  { %v154_v60 = vadd.f32 %v150_v58, %v146_v56 }
 0x292   :  { %157 = vst.msk [vmem:[#allocation3] sm:$0xff] %vm24_vm1, %v154_v60 }
 0x293   :  { %v153_v62 = vpop.xlane.xlu1 %152 }
 0x294   :  { %v155_v63 = vadd.f32 %v153_v62, %v147_v61 }
 0x296   :  { %158 = vst.msk [vmem:[#allocation3 + $0x8] sm:$0xff] %vm24_vm1, %v155_v63 }
 0x297   :  { %v187_v1 = vpop.xlane.xlu1 %186 }
 0x298   :  { %v189_v2 = vadd.f32 %v187_v1, %v179_v0 }
 0x299   :  { %v197_v3 = vld [vmem:[#allocation3] sm:$0xff] }
 0x29a   :  { %242 = vlog2.f32 %v197_v3  ;;  %191 = vst.msk [vmem:[%s366_s4 + $0x8] sm:$0xff] %vm24_vm1, %v189_v2 }
 0x29d   :  { %v198_v4 = vld [vmem:[#allocation3 + $0x8] sm:$0xff] }
 0x29e   :  { %244 = vlog2.f32 %v198_v4 }
 0x2a4   :  { %v243_v5 = vpop.eup %242 }
 0x2a5   :  { %v200_v6 = vmul.f32 0.6931472, %v243_v5 }
 0x2a7   :  { %v203_v8 = vadd.f32 %v200_v6, %v195_v7 }
 0x2a8   :  { %v245_v9 = vpop.eup %244 }
 0x2a9   :  { %205 = vst.msk [vmem:[%s367_s5] sm:$0xff] %vm24_vm1, %v203_v8  ;;  %v202_v10 = vmul.f32 0.6931472, %v245_v9 }
 0x2ab   :  { %v204_v12 = vadd.f32 %v202_v10, %v196_v11 }
 0x2ad   :  { %206 = vst.msk [vmem:[%s367_s5 + $0x8] sm:$0xff] %vm24_vm1, %v204_v12 }

</bundles_post_ra>
